<compile_context>
chip_gen: v7x
topology: tpu7x:2x2x1
jax: 0.10.0
libtpu: 0.0.40
codegen_flags: <defaults>
</compile_context>

<pallas_src>
import math

import jax
import jax.numpy as jnp
from jax.experimental import pallas as pl
from jax.experimental.pallas import tpu as pltpu

D_MODEL = 8
NUM_HEADS = 4
HEAD_DIM = D_MODEL // NUM_HEADS  # 2


def mha_kernel(x_ref, s_ref, out_ref):
    """One-shot MHA for all batches and heads.

    x_ref:   (N, D)  flattened tokens, N = B*S
    s_ref:   (R, L)  packed slab, L = N*D:
               rows [0:D]        wqkv              (cols 0:3D)
               rows [D:2D]       wo lane-tiled to L
               rows [2D:2D+N]    0/1 placement mask (token t -> lanes t*D:(t+1)*D)
               rows [2D+N:2D+2N] additive batch mask (cols 0:N, 0 / -1e30)
               row  [2D+2N]      bqkv              (cols 0:3D)
               row  [2D+2N+1]    bo lane-tiled to L
    out_ref: (1, N*D) lane-dense flattened output
    """
    N, D = x_ref.shape
    H, d = NUM_HEADS, HEAD_DIM
    scale = 1.0 / math.sqrt(d)

    r_wo = D
    r_place = 2 * D
    r_amask = 2 * D + N
    r_b = 2 * D + 2 * N
    r_bo = r_b + 1

    wqkv = s_ref[0:D, 0:3 * D]                       # (D, 3D)
    wo_t = s_ref[r_wo:r_wo + D, :]                   # (D, L)   wo lane-tiled
    place = s_ref[r_place:r_place + N, :]            # (N, L)   0/1 placement mask
    amask = s_ref[r_amask:r_amask + N, 0:N]          # (N, N)   0 / -1e30
    bqkv = s_ref[r_b:r_b + 1, 0:3 * D]               # (1, 3D)
    bo_t = s_ref[r_bo:r_bo + 1, :]                   # (1, L)

    x = x_ref[...]                                   # (N, D)

    # Single MXU matmul for all Q/K/V projections.
    qkv = jnp.dot(x, wqkv, preferred_element_type=jnp.float32) + bqkv   # (N, 3D)

    q = qkv[:, 0:D] * scale                          # (N, D) pre-scaled queries
    kvT = qkv[:, D:3 * D].T                          # (2D, N): rows 0:D = K^T, D:2D = V^T

    # Per-head attention on the VPU (the d=2 contractions stay off the MXU).
    y_rep = None                                     # lane-spread projection accumulator
    for h in range(H):
        i0, i1 = h * d, h * d + 1
        # scores = (Q_h / sqrt(d)) @ K_h^T as two VPU outer products + batch mask.
        s = (q[:, i0:i0 + 1] * kvT[i0:i0 + 1, :] +
             q[:, i1:i1 + 1] * kvT[i1:i1 + 1, :]) + amask          # (N, N)
        m = jnp.max(s, axis=-1, keepdims=True)
        p = jnp.exp(s - m)
        denom = jnp.sum(p, axis=-1, keepdims=True)
        r = pl.reciprocal(denom, approx=True)                      # EUP slot
        r = r * (2.0 - denom * r)                                  # one Newton step
        a = p * r                                                  # (N, N) attention weights
        for c in (i0, i1):
            # attn @ V channel c: VPU multiply + lane reduction.
            o_c = jnp.sum(a * kvT[D + c:D + c + 1, :], axis=-1, keepdims=True)   # (N, 1)
            # Fused "concat heads + output Linear", directly in lane-spread form.
            term = o_c * wo_t[c:c + 1, :]                          # (N, L)
            y_rep = term if y_rep is None else y_rep + term

    # Fold the token (sublane) axis into lanes with the placement mask:
    # out[0, t*D + o] = y[t, o].  Single unmasked lane-dense store.
    out_ref[...] = (jnp.sum(y_rep * place, axis=0, keepdims=True) + bo_t
                    ).astype(out_ref.dtype)


def multi_head_attention(x, wq, bq, wk, bk, wv, bv, wo, bo):
    """x: (B, S, D_MODEL); packed weights (D, D) with head h in columns/rows
    [h*d : (h+1)*d] (y = x @ W + b convention, same math as PyTorch's
    x @ W_pt.T + b); biases (1, D).  Returns (B, S, D_MODEL)."""
    B, S, D = x.shape
    assert D == D_MODEL
    N = B * S
    L = N * D                                        # 128 for the test config
    f32 = jnp.float32

    # ---- wrapper-side packing (weights are static; assembled once by XLA) ----
    wqkv = jnp.concatenate([wq, wk, wv], axis=1).astype(f32)            # (D, 3D)
    bqkv = jnp.concatenate([bq, bk, bv], axis=1).astype(f32)            # (1, 3D)
    wo_t = jnp.tile(wo.astype(f32), (1, N))                             # (D, L)
    bo_t = jnp.tile(bo.astype(f32), (1, N))                             # (1, L)
    tok = jnp.arange(N)
    lane = jnp.arange(L)
    place = (lane[None, :] // D == tok[:, None]).astype(f32)            # (N, L)
    amask = jnp.where(tok[:, None] // S == tok[None, :] // S,
                      0.0, -1e30).astype(f32)                           # (N, N)

    rows = 2 * D + 2 * N + 2
    rows_padded = -(-rows // 8) * 8
    slab = jnp.zeros((rows_padded, L), f32)
    slab = slab.at[0:D, 0:3 * D].set(wqkv)
    slab = slab.at[D:2 * D, :].set(wo_t)
    slab = slab.at[2 * D:2 * D + N, :].set(place)
    slab = slab.at[2 * D + N:2 * D + 2 * N, 0:N].set(amask)
    slab = slab.at[2 * D + 2 * N, 0:3 * D].set(bqkv[0])
    slab = slab.at[2 * D + 2 * N + 1, :].set(bo_t[0])

    xf = x.reshape(N, D).astype(f32)

    # Advisory cost estimate (tiny kernel; keeps XLA from over-scheduling).
    flops = (2 * N * D * 3 * D                       # QKV projection
             + NUM_HEADS * 10 * N * N                # scores + softmax (VPU)
             + D * 3 * N * N                         # attn @ V (mul + lane reduce)
             + D * 2 * N * L                         # lane-spread output projection
             + 3 * N * L)                            # placement fold + bias
    cost = pl.CostEstimate(flops=flops,
                           transcendentals=NUM_HEADS * N * N + NUM_HEADS * N,
                           bytes_accessed=(slab.size + xf.size + L) * 4)

    out = pl.pallas_call(
        mha_kernel,
        out_shape=jax.ShapeDtypeStruct((1, L), f32),
        # No grid: single step, whole arrays resident in VMEM (2 input DMAs,
        # 1 lane-dense output DMA).
        in_specs=[pl.BlockSpec(memory_space=pltpu.MemorySpace.VMEM),
                  pl.BlockSpec(memory_space=pltpu.MemorySpace.VMEM)],
        out_specs=pl.BlockSpec(memory_space=pltpu.MemorySpace.VMEM),
        cost_estimate=cost,
    )(xf, slab)

    return out.reshape(B, S, D).astype(x.dtype)


def reference_mha(x, wq, bq, wk, bk, wv, bv, wo, bo):
    """Pure-JAX mirror of the PyTorch forward (eval mode)."""
    q = x @ wq + bq[0]
    k = x @ wk + bk[0]
    v = x @ wv + bv[0]
    outs = []
    for h in range(NUM_HEADS):
        sl = slice(h * HEAD_DIM, (h + 1) * HEAD_DIM)
        s = jnp.einsum("bsd,btd->bst", q[..., sl], k[..., sl]) / math.sqrt(HEAD_DIM)
        a = jax.nn.softmax(s, axis=-1)
        outs.append(jnp.einsum("bst,btd->bsd", a, v[..., sl]))
    cat = jnp.concatenate(outs, axis=-1)
    return cat @ wo + bo[0]


if __name__ == "__main__":
    key = jax.random.PRNGKey(0)
    kx, kq, kbq, kk, kbk, kv, kbv, ko, kbo = jax.random.split(key, 9)

    B, S = 2, 8  # small shapes consistent with d_model=8, num_heads=4
    x = jax.random.normal(kx, (B, S, D_MODEL), dtype=jnp.float32)

    # Deterministic synthetic parameters.  Per-head Linear(d_model, d) weights
    # are packed as columns of a (d_model, num_heads*d) = (8, 8) matrix
    # (y = x @ W + b convention, identical math to PyTorch's x @ W_pt.T + b).
    scale_init = 1.0 / math.sqrt(D_MODEL)
    wq = jax.random.normal(kq, (D_MODEL, D_MODEL), dtype=jnp.float32) * scale_init
    bq = jax.random.normal(kbq, (1, D_MODEL), dtype=jnp.float32) * scale_init
    wk = jax.random.normal(kk, (D_MODEL, D_MODEL), dtype=jnp.float32) * scale_init
    bk = jax.random.normal(kbk, (1, D_MODEL), dtype=jnp.float32) * scale_init
    wv = jax.random.normal(kv, (D_MODEL, D_MODEL), dtype=jnp.float32) * scale_init
    bv = jax.random.normal(kbv, (1, D_MODEL), dtype=jnp.float32) * scale_init
    wo = jax.random.normal(ko, (D_MODEL, D_MODEL), dtype=jnp.float32) * scale_init
    bo = jax.random.normal(kbo, (1, D_MODEL), dtype=jnp.float32) * scale_init

    out = multi_head_attention(x, wq, bq, wk, bk, wv, bv, wo, bo)
    out = jax.block_until_ready(out)

    ref = reference_mha(x, wq, bq, wk, bk, wv, bv, wo, bo)
    assert out.shape == (B, S, D_MODEL)
    assert jnp.allclose(out, ref, atol=2e-5, rtol=2e-5), "mismatch vs reference"

    print("KERNEL_OK")
</pallas_src>

<mosaic_0001>
module attributes {stable_mosaic.version = 11 : i64} {
  func.func @mha_kernel(%arg0: memref<16x8xf32, #tpu.memory_space<vmem>>, %arg1: memref<56x128xf32, #tpu.memory_space<vmem>>, %arg2: memref<1x128xf32, #tpu.memory_space<vmem>>) attributes {dimension_semantics = [], scalar_prefetch = 0 : i64, scratch_operands = 0 : i64, tpu.core_type = #tpu.core_type<tc>} {
    %c0 = arith.constant 0 : index
    %c0_0 = arith.constant 0 : index
    %0 = vector.load %arg1[%c0, %c0_0] : memref<56x128xf32, #tpu.memory_space<vmem>>, vector<8x24xf32>
    %c8 = arith.constant 8 : index
    %c0_1 = arith.constant 0 : index
    %1 = vector.load %arg1[%c8, %c0_1] : memref<56x128xf32, #tpu.memory_space<vmem>>, vector<8x128xf32>
    %c16 = arith.constant 16 : index
    %c0_2 = arith.constant 0 : index
    %2 = vector.load %arg1[%c16, %c0_2] : memref<56x128xf32, #tpu.memory_space<vmem>>, vector<16x128xf32>
    %c32 = arith.constant 32 : index
    %c0_3 = arith.constant 0 : index
    %3 = vector.load %arg1[%c32, %c0_3] : memref<56x128xf32, #tpu.memory_space<vmem>>, vector<16x16xf32>
    %c48 = arith.constant 48 : index
    %c0_4 = arith.constant 0 : index
    %4 = vector.load %arg1[%c48, %c0_4] : memref<56x128xf32, #tpu.memory_space<vmem>>, vector<1x24xf32>
    %c49 = arith.constant 49 : index
    %c0_5 = arith.constant 0 : index
    %5 = vector.load %arg1[%c49, %c0_5] : memref<56x128xf32, #tpu.memory_space<vmem>>, vector<1x128xf32>
    %c0_6 = arith.constant 0 : index
    %c0_7 = arith.constant 0 : index
    %6 = vector.load %arg0[%c0_6, %c0_7] : memref<16x8xf32, #tpu.memory_space<vmem>>, vector<16x8xf32>
    %cst = arith.constant dense<0.000000e+00> : vector<16x24xf32>
    %7 = tpu.matmul %6, %0, %cst {dimension_numbers = #tpu.dot_dimension_numbers<[1], [0], [0], [1], [0, 0, 1, 1], [], []>} : vector<16x8xf32>, vector<8x24xf32>, vector<16x24xf32> -> vector<16x24xf32>
    %8 = vector.broadcast %4 : vector<1x24xf32> to vector<16x24xf32>
    %9 = arith.addf %7, %8 : vector<16x24xf32>
    %10 = vector.extract_strided_slice %9 {offsets = [0, 0], sizes = [16, 8], strides = [1, 1]} : vector<16x24xf32> to vector<16x8xf32>
    %cst_8 = arith.constant 0.707106769 : f32
    %11 = vector.broadcast %cst_8 : f32 to vector<16x8xf32>
    %12 = arith.mulf %10, %11 : vector<16x8xf32>
    %13 = vector.extract_strided_slice %9 {offsets = [0, 8], sizes = [16, 16], strides = [1, 1]} : vector<16x24xf32> to vector<16x16xf32>
    %14 = tpu.transpose %13, [1, 0] : vector<16x16xf32> -> vector<16x16xf32>
    %15 = vector.extract_strided_slice %12 {offsets = [0, 0], sizes = [16, 1], strides = [1, 1]} : vector<16x8xf32> to vector<16x1xf32>
    %16 = vector.extract_strided_slice %14 {offsets = [0, 0], sizes = [1, 16], strides = [1, 1]} : vector<16x16xf32> to vector<1x16xf32>
    %17 = vector.broadcast %15 : vector<16x1xf32> to vector<16x16xf32>
    %18 = vector.broadcast %16 : vector<1x16xf32> to vector<16x16xf32>
    %19 = arith.mulf %17, %18 : vector<16x16xf32>
    %20 = vector.extract_strided_slice %12 {offsets = [0, 1], sizes = [16, 1], strides = [1, 1]} : vector<16x8xf32> to vector<16x1xf32>
    %21 = vector.extract_strided_slice %14 {offsets = [1, 0], sizes = [1, 16], strides = [1, 1]} : vector<16x16xf32> to vector<1x16xf32>
    %22 = vector.broadcast %20 : vector<16x1xf32> to vector<16x16xf32>
    %23 = vector.broadcast %21 : vector<1x16xf32> to vector<16x16xf32>
    %24 = arith.mulf %22, %23 : vector<16x16xf32>
    %25 = arith.addf %19, %24 : vector<16x16xf32>
    %26 = arith.addf %25, %3 : vector<16x16xf32>
    %cst_9 = arith.constant dense<0xFF800000> : vector<16xf32>
    %27 = vector.multi_reduction <maximumf>, %26, %cst_9 [1] : vector<16x16xf32> to vector<16xf32>
    %28 = vector.shape_cast %27 : vector<16xf32> to vector<16x1xf32>
    %29 = vector.broadcast %28 : vector<16x1xf32> to vector<16x16xf32>
    %30 = arith.subf %26, %29 : vector<16x16xf32>
    %31 = math.exp %30 : vector<16x16xf32>
    %cst_10 = arith.constant dense<0.000000e+00> : vector<16xf32>
    %32 = vector.multi_reduction <add>, %31, %cst_10 [1] : vector<16x16xf32> to vector<16xf32>
    %33 = vector.shape_cast %32 : vector<16xf32> to vector<16x1xf32>
    %34 = tpu.reciprocal %33 {approx = true} : vector<16x1xf32> -> vector<16x1xf32>
    %35 = arith.mulf %33, %34 : vector<16x1xf32>
    %cst_11 = arith.constant 2.000000e+00 : f32
    %36 = vector.broadcast %cst_11 : f32 to vector<16x1xf32>
    %37 = arith.subf %36, %35 : vector<16x1xf32>
    %38 = arith.mulf %34, %37 : vector<16x1xf32>
    %39 = vector.broadcast %38 : vector<16x1xf32> to vector<16x16xf32>
    %40 = arith.mulf %31, %39 : vector<16x16xf32>
    %41 = vector.extract_strided_slice %14 {offsets = [8, 0], sizes = [1, 16], strides = [1, 1]} : vector<16x16xf32> to vector<1x16xf32>
    %42 = vector.broadcast %41 : vector<1x16xf32> to vector<16x16xf32>
    %43 = arith.mulf %40, %42 : vector<16x16xf32>
    %cst_12 = arith.constant dense<0.000000e+00> : vector<16xf32>
    %44 = vector.multi_reduction <add>, %43, %cst_12 [1] : vector<16x16xf32> to vector<16xf32>
    %45 = vector.shape_cast %44 : vector<16xf32> to vector<16x1xf32>
    %46 = vector.extract_strided_slice %1 {offsets = [0, 0], sizes = [1, 128], strides = [1, 1]} : vector<8x128xf32> to vector<1x128xf32>
    %47 = vector.broadcast %45 : vector<16x1xf32> to vector<16x128xf32>
    %48 = vector.broadcast %46 : vector<1x128xf32> to vector<16x128xf32>
    %49 = arith.mulf %47, %48 : vector<16x128xf32>
    %50 = vector.extract_strided_slice %14 {offsets = [9, 0], sizes = [1, 16], strides = [1, 1]} : vector<16x16xf32> to vector<1x16xf32>
    %51 = vector.broadcast %50 : vector<1x16xf32> to vector<16x16xf32>
    %52 = arith.mulf %40, %51 : vector<16x16xf32>
    %cst_13 = arith.constant dense<0.000000e+00> : vector<16xf32>
    %53 = vector.multi_reduction <add>, %52, %cst_13 [1] : vector<16x16xf32> to vector<16xf32>
    %54 = vector.shape_cast %53 : vector<16xf32> to vector<16x1xf32>
    %55 = vector.extract_strided_slice %1 {offsets = [1, 0], sizes = [1, 128], strides = [1, 1]} : vector<8x128xf32> to vector<1x128xf32>
    %56 = vector.broadcast %54 : vector<16x1xf32> to vector<16x128xf32>
    %57 = vector.broadcast %55 : vector<1x128xf32> to vector<16x128xf32>
    %58 = arith.mulf %56, %57 : vector<16x128xf32>
    %59 = arith.addf %49, %58 : vector<16x128xf32>
    %60 = vector.extract_strided_slice %12 {offsets = [0, 2], sizes = [16, 1], strides = [1, 1]} : vector<16x8xf32> to vector<16x1xf32>
    %61 = vector.extract_strided_slice %14 {offsets = [2, 0], sizes = [1, 16], strides = [1, 1]} : vector<16x16xf32> to vector<1x16xf32>
    %62 = vector.broadcast %60 : vector<16x1xf32> to vector<16x16xf32>
    %63 = vector.broadcast %61 : vector<1x16xf32> to vector<16x16xf32>
    %64 = arith.mulf %62, %63 : vector<16x16xf32>
    %65 = vector.extract_strided_slice %12 {offsets = [0, 3], sizes = [16, 1], strides = [1, 1]} : vector<16x8xf32> to vector<16x1xf32>
    %66 = vector.extract_strided_slice %14 {offsets = [3, 0], sizes = [1, 16], strides = [1, 1]} : vector<16x16xf32> to vector<1x16xf32>
    %67 = vector.broadcast %65 : vector<16x1xf32> to vector<16x16xf32>
    %68 = vector.broadcast %66 : vector<1x16xf32> to vector<16x16xf32>
    %69 = arith.mulf %67, %68 : vector<16x16xf32>
    %70 = arith.addf %64, %69 : vector<16x16xf32>
    %71 = arith.addf %70, %3 : vector<16x16xf32>
    %cst_14 = arith.constant dense<0xFF800000> : vector<16xf32>
    %72 = vector.multi_reduction <maximumf>, %71, %cst_14 [1] : vector<16x16xf32> to vector<16xf32>
    %73 = vector.shape_cast %72 : vector<16xf32> to vector<16x1xf32>
    %74 = vector.broadcast %73 : vector<16x1xf32> to vector<16x16xf32>
    %75 = arith.subf %71, %74 : vector<16x16xf32>
    %76 = math.exp %75 : vector<16x16xf32>
    %cst_15 = arith.constant dense<0.000000e+00> : vector<16xf32>
    %77 = vector.multi_reduction <add>, %76, %cst_15 [1] : vector<16x16xf32> to vector<16xf32>
    %78 = vector.shape_cast %77 : vector<16xf32> to vector<16x1xf32>
    %79 = tpu.reciprocal %78 {approx = true} : vector<16x1xf32> -> vector<16x1xf32>
    %80 = arith.mulf %78, %79 : vector<16x1xf32>
    %cst_16 = arith.constant 2.000000e+00 : f32
    %81 = vector.broadcast %cst_16 : f32 to vector<16x1xf32>
    %82 = arith.subf %81, %80 : vector<16x1xf32>
    %83 = arith.mulf %79, %82 : vector<16x1xf32>
    %84 = vector.broadcast %83 : vector<16x1xf32> to vector<16x16xf32>
    %85 = arith.mulf %76, %84 : vector<16x16xf32>
    %86 = vector.extract_strided_slice %14 {offsets = [10, 0], sizes = [1, 16], strides = [1, 1]} : vector<16x16xf32> to vector<1x16xf32>
    %87 = vector.broadcast %86 : vector<1x16xf32> to vector<16x16xf32>
    %88 = arith.mulf %85, %87 : vector<16x16xf32>
    %cst_17 = arith.constant dense<0.000000e+00> : vector<16xf32>
    %89 = vector.multi_reduction <add>, %88, %cst_17 [1] : vector<16x16xf32> to vector<16xf32>
    %90 = vector.shape_cast %89 : vector<16xf32> to vector<16x1xf32>
    %91 = vector.extract_strided_slice %1 {offsets = [2, 0], sizes = [1, 128], strides = [1, 1]} : vector<8x128xf32> to vector<1x128xf32>
    %92 = vector.broadcast %90 : vector<16x1xf32> to vector<16x128xf32>
    %93 = vector.broadcast %91 : vector<1x128xf32> to vector<16x128xf32>
    %94 = arith.mulf %92, %93 : vector<16x128xf32>
    %95 = arith.addf %59, %94 : vector<16x128xf32>
    %96 = vector.extract_strided_slice %14 {offsets = [11, 0], sizes = [1, 16], strides = [1, 1]} : vector<16x16xf32> to vector<1x16xf32>
    %97 = vector.broadcast %96 : vector<1x16xf32> to vector<16x16xf32>
    %98 = arith.mulf %85, %97 : vector<16x16xf32>
    %cst_18 = arith.constant dense<0.000000e+00> : vector<16xf32>
    %99 = vector.multi_reduction <add>, %98, %cst_18 [1] : vector<16x16xf32> to vector<16xf32>
    %100 = vector.shape_cast %99 : vector<16xf32> to vector<16x1xf32>
    %101 = vector.extract_strided_slice %1 {offsets = [3, 0], sizes = [1, 128], strides = [1, 1]} : vector<8x128xf32> to vector<1x128xf32>
    %102 = vector.broadcast %100 : vector<16x1xf32> to vector<16x128xf32>
    %103 = vector.broadcast %101 : vector<1x128xf32> to vector<16x128xf32>
    %104 = arith.mulf %102, %103 : vector<16x128xf32>
    %105 = arith.addf %95, %104 : vector<16x128xf32>
    %106 = vector.extract_strided_slice %12 {offsets = [0, 4], sizes = [16, 1], strides = [1, 1]} : vector<16x8xf32> to vector<16x1xf32>
    %107 = vector.extract_strided_slice %14 {offsets = [4, 0], sizes = [1, 16], strides = [1, 1]} : vector<16x16xf32> to vector<1x16xf32>
    %108 = vector.broadcast %106 : vector<16x1xf32> to vector<16x16xf32>
    %109 = vector.broadcast %107 : vector<1x16xf32> to vector<16x16xf32>
    %110 = arith.mulf %108, %109 : vector<16x16xf32>
    %111 = vector.extract_strided_slice %12 {offsets = [0, 5], sizes = [16, 1], strides = [1, 1]} : vector<16x8xf32> to vector<16x1xf32>
    %112 = vector.extract_strided_slice %14 {offsets = [5, 0], sizes = [1, 16], strides = [1, 1]} : vector<16x16xf32> to vector<1x16xf32>
    %113 = vector.broadcast %111 : vector<16x1xf32> to vector<16x16xf32>
    %114 = vector.broadcast %112 : vector<1x16xf32> to vector<16x16xf32>
    %115 = arith.mulf %113, %114 : vector<16x16xf32>
    %116 = arith.addf %110, %115 : vector<16x16xf32>
    %117 = arith.addf %116, %3 : vector<16x16xf32>
    %cst_19 = arith.constant dense<0xFF800000> : vector<16xf32>
    %118 = vector.multi_reduction <maximumf>, %117, %cst_19 [1] : vector<16x16xf32> to vector<16xf32>
    %119 = vector.shape_cast %118 : vector<16xf32> to vector<16x1xf32>
    %120 = vector.broadcast %119 : vector<16x1xf32> to vector<16x16xf32>
    %121 = arith.subf %117, %120 : vector<16x16xf32>
    %122 = math.exp %121 : vector<16x16xf32>
    %cst_20 = arith.constant dense<0.000000e+00> : vector<16xf32>
    %123 = vector.multi_reduction <add>, %122, %cst_20 [1] : vector<16x16xf32> to vector<16xf32>
    %124 = vector.shape_cast %123 : vector<16xf32> to vector<16x1xf32>
    %125 = tpu.reciprocal %124 {approx = true} : vector<16x1xf32> -> vector<16x1xf32>
    %126 = arith.mulf %124, %125 : vector<16x1xf32>
    %cst_21 = arith.constant 2.000000e+00 : f32
    %127 = vector.broadcast %cst_21 : f32 to vector<16x1xf32>
    %128 = arith.subf %127, %126 : vector<16x1xf32>
    %129 = arith.mulf %125, %128 : vector<16x1xf32>
    %130 = vector.broadcast %129 : vector<16x1xf32> to vector<16x16xf32>
    %131 = arith.mulf %122, %130 : vector<16x16xf32>
    %132 = vector.extract_strided_slice %14 {offsets = [12, 0], sizes = [1, 16], strides = [1, 1]} : vector<16x16xf32> to vector<1x16xf32>
    %133 = vector.broadcast %132 : vector<1x16xf32> to vector<16x16xf32>
    %134 = arith.mulf %131, %133 : vector<16x16xf32>
    %cst_22 = arith.constant dense<0.000000e+00> : vector<16xf32>
    %135 = vector.multi_reduction <add>, %134, %cst_22 [1] : vector<16x16xf32> to vector<16xf32>
    %136 = vector.shape_cast %135 : vector<16xf32> to vector<16x1xf32>
    %137 = vector.extract_strided_slice %1 {offsets = [4, 0], sizes = [1, 128], strides = [1, 1]} : vector<8x128xf32> to vector<1x128xf32>
    %138 = vector.broadcast %136 : vector<16x1xf32> to vector<16x128xf32>
    %139 = vector.broadcast %137 : vector<1x128xf32> to vector<16x128xf32>
    %140 = arith.mulf %138, %139 : vector<16x128xf32>
    %141 = arith.addf %105, %140 : vector<16x128xf32>
    %142 = vector.extract_strided_slice %14 {offsets = [13, 0], sizes = [1, 16], strides = [1, 1]} : vector<16x16xf32> to vector<1x16xf32>
    %143 = vector.broadcast %142 : vector<1x16xf32> to vector<16x16xf32>
    %144 = arith.mulf %131, %143 : vector<16x16xf32>
    %cst_23 = arith.constant dense<0.000000e+00> : vector<16xf32>
    %145 = vector.multi_reduction <add>, %144, %cst_23 [1] : vector<16x16xf32> to vector<16xf32>
    %146 = vector.shape_cast %145 : vector<16xf32> to vector<16x1xf32>
    %147 = vector.extract_strided_slice %1 {offsets = [5, 0], sizes = [1, 128], strides = [1, 1]} : vector<8x128xf32> to vector<1x128xf32>
    %148 = vector.broadcast %146 : vector<16x1xf32> to vector<16x128xf32>
    %149 = vector.broadcast %147 : vector<1x128xf32> to vector<16x128xf32>
    %150 = arith.mulf %148, %149 : vector<16x128xf32>
    %151 = arith.addf %141, %150 : vector<16x128xf32>
    %152 = vector.extract_strided_slice %12 {offsets = [0, 6], sizes = [16, 1], strides = [1, 1]} : vector<16x8xf32> to vector<16x1xf32>
    %153 = vector.extract_strided_slice %14 {offsets = [6, 0], sizes = [1, 16], strides = [1, 1]} : vector<16x16xf32> to vector<1x16xf32>
    %154 = vector.broadcast %152 : vector<16x1xf32> to vector<16x16xf32>
    %155 = vector.broadcast %153 : vector<1x16xf32> to vector<16x16xf32>
    %156 = arith.mulf %154, %155 : vector<16x16xf32>
    %157 = vector.extract_strided_slice %12 {offsets = [0, 7], sizes = [16, 1], strides = [1, 1]} : vector<16x8xf32> to vector<16x1xf32>
    %158 = vector.extract_strided_slice %14 {offsets = [7, 0], sizes = [1, 16], strides = [1, 1]} : vector<16x16xf32> to vector<1x16xf32>
    %159 = vector.broadcast %157 : vector<16x1xf32> to vector<16x16xf32>
    %160 = vector.broadcast %158 : vector<1x16xf32> to vector<16x16xf32>
    %161 = arith.mulf %159, %160 : vector<16x16xf32>
    %162 = arith.addf %156, %161 : vector<16x16xf32>
    %163 = arith.addf %162, %3 : vector<16x16xf32>
    %cst_24 = arith.constant dense<0xFF800000> : vector<16xf32>
    %164 = vector.multi_reduction <maximumf>, %163, %cst_24 [1] : vector<16x16xf32> to vector<16xf32>
    %165 = vector.shape_cast %164 : vector<16xf32> to vector<16x1xf32>
    %166 = vector.broadcast %165 : vector<16x1xf32> to vector<16x16xf32>
    %167 = arith.subf %163, %166 : vector<16x16xf32>
    %168 = math.exp %167 : vector<16x16xf32>
    %cst_25 = arith.constant dense<0.000000e+00> : vector<16xf32>
    %169 = vector.multi_reduction <add>, %168, %cst_25 [1] : vector<16x16xf32> to vector<16xf32>
    %170 = vector.shape_cast %169 : vector<16xf32> to vector<16x1xf32>
    %171 = tpu.reciprocal %170 {approx = true} : vector<16x1xf32> -> vector<16x1xf32>
    %172 = arith.mulf %170, %171 : vector<16x1xf32>
    %cst_26 = arith.constant 2.000000e+00 : f32
    %173 = vector.broadcast %cst_26 : f32 to vector<16x1xf32>
    %174 = arith.subf %173, %172 : vector<16x1xf32>
    %175 = arith.mulf %171, %174 : vector<16x1xf32>
    %176 = vector.broadcast %175 : vector<16x1xf32> to vector<16x16xf32>
    %177 = arith.mulf %168, %176 : vector<16x16xf32>
    %178 = vector.extract_strided_slice %14 {offsets = [14, 0], sizes = [1, 16], strides = [1, 1]} : vector<16x16xf32> to vector<1x16xf32>
    %179 = vector.broadcast %178 : vector<1x16xf32> to vector<16x16xf32>
    %180 = arith.mulf %177, %179 : vector<16x16xf32>
    %cst_27 = arith.constant dense<0.000000e+00> : vector<16xf32>
    %181 = vector.multi_reduction <add>, %180, %cst_27 [1] : vector<16x16xf32> to vector<16xf32>
    %182 = vector.shape_cast %181 : vector<16xf32> to vector<16x1xf32>
    %183 = vector.extract_strided_slice %1 {offsets = [6, 0], sizes = [1, 128], strides = [1, 1]} : vector<8x128xf32> to vector<1x128xf32>
    %184 = vector.broadcast %182 : vector<16x1xf32> to vector<16x128xf32>
    %185 = vector.broadcast %183 : vector<1x128xf32> to vector<16x128xf32>
    %186 = arith.mulf %184, %185 : vector<16x128xf32>
    %187 = arith.addf %151, %186 : vector<16x128xf32>
    %188 = vector.extract_strided_slice %14 {offsets = [15, 0], sizes = [1, 16], strides = [1, 1]} : vector<16x16xf32> to vector<1x16xf32>
    %189 = vector.broadcast %188 : vector<1x16xf32> to vector<16x16xf32>
    %190 = arith.mulf %177, %189 : vector<16x16xf32>
    %cst_28 = arith.constant dense<0.000000e+00> : vector<16xf32>
    %191 = vector.multi_reduction <add>, %190, %cst_28 [1] : vector<16x16xf32> to vector<16xf32>
    %192 = vector.shape_cast %191 : vector<16xf32> to vector<16x1xf32>
    %193 = vector.extract_strided_slice %1 {offsets = [7, 0], sizes = [1, 128], strides = [1, 1]} : vector<8x128xf32> to vector<1x128xf32>
    %194 = vector.broadcast %192 : vector<16x1xf32> to vector<16x128xf32>
    %195 = vector.broadcast %193 : vector<1x128xf32> to vector<16x128xf32>
    %196 = arith.mulf %194, %195 : vector<16x128xf32>
    %197 = arith.addf %187, %196 : vector<16x128xf32>
    %198 = arith.mulf %197, %2 : vector<16x128xf32>
    %cst_29 = arith.constant dense<0.000000e+00> : vector<128xf32>
    %199 = vector.multi_reduction <add>, %198, %cst_29 [0] : vector<16x128xf32> to vector<128xf32>
    %200 = vector.shape_cast %199 : vector<128xf32> to vector<1x128xf32>
    %201 = arith.addf %200, %5 : vector<1x128xf32>
    %c0_30 = arith.constant 0 : index
    %c0_31 = arith.constant 0 : index
    %202 = vector.load %arg2[%c0_30, %c0_31] : memref<1x128xf32, #tpu.memory_space<vmem>>, vector<1x128xf32>
    tpu.vector_store %arg2[%c0_30, %c0_31], %201 {strides = array<i32>} : memref<1x128xf32, #tpu.memory_space<vmem>>, vector<1x128xf32>,
    return
  }
}

</mosaic_0001>

<bundles_post_ra>
// kernel: tpu_custom_call.1
= control target key start
LH: loop header
LB: loop body
LE: loop exit
PB: predicated region body
PF: predicated region fallthrough
CT: control target
= control target key end

     0   :  { %7 = vsyncpa [#allocation3], 0  ;;  %s879_s0 = inlined_call_operand.vmem [shape: f32[16,8], index: 0, kind: input, shape index: {}]   ;;  %s880_s1 = inlined_call_operand.hbm [shape: f32[56,128], index: 1, kind: input, shape index: {}]   ;;  %s881_s2 = inlined_call_operand.hbm [shape: f32[1,128], index: 2, kind: output, shape index: {}]  }
   0x1   :  { %8 = vsyncpa [#allocation4], 0  ;;  %s712_s9 = smov [#allocation2]   ;;  %s664_s13 = scalar_lea.hbm %s880_s1, 896 }
   0x2   :  { %s16_s10 = sshll.u32 %s712_s9, 4  ;;  %p665_p0 = scmp.ne.s32.totalorder %s880_s1, %s664_s13  ;;  %s17_s10 = int_to_ptr.vmem [resolvable:$true] %s16_s10 }
   0x3   :  { %p668_p1 = scmp.lt.u32.totalorder %s664_s13, %s880_s1 }
   0x5   :  { %p670_p2 = pnand %p668_p1, %p665_p0 }
   0x7   :  { %673 = shalt.err (!%p670_p2)
}
   0x8   :  { %s674_s18 = scalar_lea.vmem %s17_s10, 896  ;;  %p679_p4 = scmp.lt.s32.totalorder %s17_s10, %s17_s10 }
   0x9   :  { %p675_p3 = scmp.ne.s32.totalorder %s17_s10, %s674_s18  ;;  %p680_p5 = scmp.lt.s32.totalorder %s674_s18, %s674_s18 }
   0xb   :  { %p681_p6 = por %p680_p5, %p679_p4 }
   0xd   :  { %p682_p7 = pnand %p681_p6, %p675_p3 }
   0xf   :  { %685 = shalt.err (!%p682_p7)
}
  0x10   :  { %s713_s19 = smov 128   ;;  %s714_s20 = smov 8  }
  0x11   :  { %22 = dma.hbm_to_vmem [thread:$0]  %s880_s1, 896, %s17_s10, [#allocation3], %s713_s19, %s713_s19, %s714_s20  }
  0x12   :  { %708 = dma.done.wait [#allocation3], 896  }
  0x13   :  { %709 = vsyncadd [#allocation3], 4294966400  ;;  %vm40_vm0 = vcmask 64512   ;;  %v26_v0 = vld [vmem:[#allocation2] sm:$0xff]  ;;  %v35_v2 = vld [vmem:[%s879_s0 + $0x8] sm:$0xff]  ;;  %v715_v3 = vmov 0   ;;  %v174_v30 = vlaneseq }
  0x14   :  { %v34_v1 = vld [vmem:[%s879_s0] sm:$0xff]  ;;  %597 = vmatprep.subr.mxu0 %v26_v0  ;;  %616 = vset.pattern.permute.xlu1 %v715_v3  ;;  %v716_v4 = vmov 2   ;;  %v591_v5 = vld [vmem:[#allocation2 + $0x30] ss:$0 sm:$0xff]  ;;  %s717_s1 = smov 120   ;;  %v718_v11 = vmov 1  }
  0x15   :  { %599 = vmatprep.mubr.msk.f32.mxu0 %vm40_vm0, %v34_v1  ;;  %598 = vmatpush3.msra.mxu0 %v26_v0  ;;  %v719_v12 = vmov 3   ;;  %v720_v13 = vmov 5   ;;  %v721_v14 = vmov 4   ;;  %v722_v16 = vmov 6   ;;  %v30_v54 = vld [vmem:[#allocation2 + $0x20] sm:$0xff]  ;;  %v31_v61 = vld [vmem:[#allocation2 + $0x28] sm:$0xff] }
  0x16   :  { %600 = vmatmul.mubr.msk.f32.vlgmr.msra.gmra.mrb[0].mxu0 %vm40_vm0, %v35_v2  ;;  %618 = vset.pattern.permute.xlu0 %v716_v4  ;;  %v723_v17 = vmov 7   ;;  %v175_v33 = vshrl.u32 %v174_v30, 7  ;;  %vm198_vm1 = vcmask 130048   ;;  %s724_s0 = smov [#allocation5]  }
  0x17   :  { %s582_s27 = sshll.u32 %s724_s0, 4  ;;  %s583_s27 = int_to_ptr.vmem [resolvable:$true] %s582_s27 }
  0x18   :  { %v760_v36 = vsub.s32 4, %v175_v33  ;;  %v762_v37 = vsub.s32 5, %v175_v33  ;;  %v764_v38 = vsub.s32 0, %v175_v33  ;;  %v766_v39 = vsub.s32 1, %v175_v33  ;;  %s686_s28 = scalar_lea.vmem %s583_s27, 16  ;;  %s690_s29 = scalar_lea.vmem %s583_s27, 32 }
  0x19   :  { %v768_v40 = vsub.s32 2, %v175_v33  ;;  %v770_v41 = vsub.s32 3, %v175_v33  ;;  %p687_p8 = scmp.ne.s32.totalorder %s583_s27, %s686_s28  ;;  %p691_p9 = scmp.lt.s32.totalorder %s583_s27, %s583_s27 }
  0x1a   :  { %p692_p10 = scmp.lt.s32.totalorder %s690_s29, %s686_s28 }
  0x1c   :  { %p693_p11 = por %p692_p10, %p691_p9 }
  0x1e   :  { %p694_p12 = pnand %p693_p11, %p687_p8 }
  0xe9   :  { %v601_v6 = vpop.f32.mrb[0].mxu0 }
  0xea   :  { %v119_v7 = vadd.f32 %v601_v6, %v591_v5  ;;  %v113_v8 = vpop.f32.mrb[1].mxu0 }
  0xeb   :  { %v114_v9 = vadd.f32 %v591_v5, %v113_v8 }
  0xec   :  { %v123_v10 = vmul.f32 0.70710677, %v119_v7 }
  0xed   :  { %126 = vrot.lane.b32.xlu0 %v114_v9, %s717_s1  ;;  %v122_v15 = vmul.f32 0.70710677, %v114_v9 }
  0xee   :  { %171 = vperm.xlu1 %616, %v123_v10  }
  0xf1   :  { %128 = vrot.lane.b32.xlu0 %v119_v7, %s717_s1 }
  0xf2   :  { %617 = vset.pattern.permute.xlu1 %v718_v11 }
  0xf3   :  { %185 = vperm.xlu1 %617, %v123_v10  }
  0xf5   :  { %270 = vperm.xlu0 %618, %v123_v10  }
  0xf7   :  { %619 = vset.pattern.permute.xlu1 %v719_v12 }
  0xf8   :  { %284 = vperm.xlu1 %619, %v123_v10  }
  0xf9   :  { %621 = vset.pattern.permute.xlu0 %v720_v13 }
  0xfa   :  { %384 = vperm.xlu0 %621, %v123_v10  }
  0xfc   :  { %620 = vset.pattern.permute.xlu1 %v721_v14 }
  0xfd   :  { %370 = vperm.xlu1 %620, %v123_v10  }
  0xfe   :  { %624 = vset.pattern.permute.xlu0 %v718_v11 }
  0xff   :  { %181 = vperm.xlu0 %624, %v122_v15  }
 0x101   :  { %622 = vset.pattern.permute.xlu1 %v722_v16 }
 0x102   :  { %470 = vperm.xlu1 %622, %v123_v10  }
 0x103   :  { %627 = vset.pattern.permute.xlu0 %v721_v14 }
 0x104   :  { %366 = vperm.xlu0 %627, %v122_v15  }
 0x106   :  { %623 = vset.pattern.permute.xlu1 %v715_v3  ;;  %v778_v3 = vsub.s32 6, %v175_v33 }
 0x107   :  { %166 = vperm.xlu1 %623, %v122_v15  }
 0x108   :  { %630 = vset.pattern.permute.xlu0 %v723_v17 }
 0x109   :  { %480 = vperm.xlu0 %630, %v122_v15  }
 0x10b   :  { %625 = vset.pattern.permute.xlu1 %v716_v4  ;;  %v780_v4 = vsub.s32 7, %v175_v33 }
 0x10c   :  { %266 = vperm.xlu1 %625, %v122_v15  }
 0x110   :  { %626 = vset.pattern.permute.xlu1 %v719_v12 }
 0x111   :  { %280 = vperm.xlu1 %626, %v122_v15  }
 0x115   :  { %628 = vset.pattern.permute.xlu1 %v720_v13 }
 0x116   :  { %380 = vperm.xlu1 %628, %v122_v15  }
 0x11a   :  { %629 = vset.pattern.permute.xlu1 %v722_v16 }
 0x11b   :  { %466 = vperm.xlu1 %629, %v122_v15  }
 0x11f   :  { %631 = vset.pattern.permute.xlu1 %v723_v17 }
 0x120   :  { %484 = vperm.xlu1 %631, %v123_v10  }
 0x15f   :  { %v127_v18 = vpop.permute.xlu0 %126 }
 0x160   :  { %132 = vxpose.xlu1.b32.start [1/2] (short) (narrow) %v127_v18, 16 }
 0x163   :  { %v129_v19 = vpop.permute.xlu0 %128 }
 0x164   :  { %133 = vxpose.xlu1.b32.end [2/2] (short) (narrow) %v129_v19, 16 }
 0x16d   :  { %v172_v20 = vpop.permute.xlu1 %171 }
 0x172   :  { %v186_v21 = vpop.permute.xlu1 %185 }
 0x174   :  { %v271_v28 = vpop.permute.xlu0 %270 }
 0x177   :  { %v285_v22 = vpop.permute.xlu1 %284 }
 0x179   :  { %v385_v31 = vpop.permute.xlu0 %384 }
 0x17c   :  { %v371_v23 = vpop.permute.xlu1 %370 }
 0x17e   :  { %v182_v34 = vpop.permute.xlu0 %181 }
 0x181   :  { %v758_v24 = vpop.permute.xlu1 %470 }
 0x183   :  { %v367_v47 = vpop.permute.xlu0 %366 }
 0x186   :  { %v167_v25 = vpop.permute.xlu1 %166 }
 0x188   :  { %v481_v16 = vpop.permute.xlu0 %480 }
 0x18b   :  { %v267_v26 = vpop.permute.xlu1 %266 }
 0x190   :  { %v281_v27 = vpop.permute.xlu1 %280 }
 0x195   :  { %v381_v29 = vpop.permute.xlu1 %380 }
 0x19a   :  { %v467_v32 = vpop.permute.xlu1 %466 }
 0x19f   :  { %v485_v35 = vpop.permute.xlu1 %484 }
 0x1e0   :  { %v148_v42 = vpop.trf.xlu1 }
 0x1e1   :  { %v376_v43 = vrot.slane %v148_v42, %v760_v36  ;;  %v390_v44 = vrot.slane %v148_v42, %v762_v37  ;;  %v177_v45 = vrot.slane %v148_v42, %v764_v38  ;;  %v191_v46 = vrot.slane %v148_v42, %v766_v39 }
 0x1e2   :  { %v276_v48 = vrot.slane %v148_v42, %v768_v40  ;;  %v290_v49 = vrot.slane %v148_v42, %v770_v41  ;;  %v476_v10 = vrot.slane %v148_v42, %v778_v3  ;;  %v490_v11 = vrot.slane %v148_v42, %v780_v4 }
 0x1e3   :  { %v377_v50 = vmul.f32 %v376_v43, %v367_v47  ;;  %v391_v51 = vmul.f32 %v390_v44, %v381_v29  ;;  %v178_v52 = vmul.f32 %v177_v45, %v167_v25  ;;  %v192_v53 = vmul.f32 %v191_v46, %v182_v34 }
 0x1e4   :  { %v179_v55 = vmul.f32 %v177_v45, %v172_v20  ;;  %v193_v56 = vmul.f32 %v191_v46, %v186_v21  ;;  %v277_v59 = vmul.f32 %v276_v48, %v267_v26  ;;  %v291_v60 = vmul.f32 %v290_v49, %v281_v27  ;;  %v793_v42 = vpop.trf.xlu1 }
 0x1e5   :  { %v393_v57 = vadd.f32 %v391_v51, %v377_v50  ;;  %v194_v58 = vadd.f32 %v192_v53, %v178_v52  ;;  %v278_v1 = vmul.f32 %v276_v48, %v271_v28  ;;  %v292_v2 = vmul.f32 %v290_v49, %v285_v22 }
 0x1e6   :  { %v195_v62 = vadd.f32 %v193_v56, %v179_v55  ;;  %v293_v8 = vadd.f32 %v291_v60, %v277_v59  ;;  %v378_v9 = vmul.f32 %v376_v43, %v371_v23  ;;  %v392_v15 = vmul.f32 %v390_v44, %v385_v31 }
 0x1e7   :  { %v395_v63 = vadd.f32 %v393_v57, %v30_v54  ;;  %v196_v0 = vadd.f32 %v194_v58, %v30_v54  ;;  %v294_v14 = vadd.f32 %v292_v2, %v278_v1  ;;  %v477_v17 = vmul.f32 %v476_v10, %v467_v32 }
 0x1e8   :  { %v197_v7 = vadd.f32 %v195_v62, %v31_v61  ;;  %v295_v13 = vadd.f32 %v293_v8, %v30_v54  ;;  %v394_v20 = vadd.f32 %v392_v15, %v378_v9  ;;  %v491_v21 = vmul.f32 %v490_v11, %v481_v16 }
 0x1e9   :  { %v397_v5 = vsel %vm198_vm1, %v395_v63, -inf  ;;  %v199_v6 = vsel %vm198_vm1, %v196_v0, -inf  ;;  %v296_v19 = vadd.f32 %v294_v14, %v31_v61  ;;  %v478_v22 = vmul.f32 %v476_v10, %v758_v24 }
 0x1ea   :  { %398 = vmax.xlane.f32.xlu1 %v397_v5  ;;  %200 = vmax.xlane.f32.xlu0 %v199_v6  ;;  %v202_v12 = vsel %vm198_vm1, %v197_v7, -inf  ;;  %v297_v18 = vsel %vm198_vm1, %v295_v13, -inf  ;;  %v396_v25 = vadd.f32 %v394_v20, %v31_v61  ;;  %v493_v26 = vadd.f32 %v491_v21, %v477_v17 }
 0x1eb   :  { %v300_v23 = vsel %vm198_vm1, %v296_v19, -inf  ;;  %v492_v27 = vmul.f32 %v490_v11, %v485_v35 }
 0x1ec   :  { %v400_v28 = vsel %vm198_vm1, %v396_v25, -inf  ;;  %v495_v29 = vadd.f32 %v493_v26, %v30_v54 }
 0x1ed   :  { %v494_v30 = vadd.f32 %v492_v27, %v478_v22 }
 0x1ee   :  { %203 = vmax.xlane.f32.xlu0 %v202_v12  ;;  %v497_v31 = vsel %vm198_vm1, %v495_v29, -inf }
 0x1ef   :  { %v496_v32 = vadd.f32 %v494_v30, %v31_v61 }
 0x1f1   :  { %v500_v33 = vsel %vm198_vm1, %v496_v32, -inf }
 0x1f2   :  { %298 = vmax.xlane.f32.xlu0 %v297_v18 }
 0x1f6   :  { %301 = vmax.xlane.f32.xlu0 %v300_v23 }
 0x1fa   :  { %401 = vmax.xlane.f32.xlu0 %v400_v28 }
 0x1fe   :  { %498 = vmax.xlane.f32.xlu0 %v497_v31 }
 0x202   :  { %501 = vmax.xlane.f32.xlu0 %v500_v33 }
 0x277   :  { %v201_v34 = vpop.xlane.xlu0 %200  ;;  %v399_v46 = vpop.xlane.xlu1 %398 }
 0x278   :  { %v205_v24 = vsub.f32 %v196_v0, %v201_v34  ;;  %v403_v49 = vsub.f32 %v395_v63, %v399_v46  ;;  %v248_v34 = vrot.slane %v793_v42, %v766_v39 }
 0x27a   :  { %v207_v43 = vmul.f32 1.442695, %v205_v24  ;;  %v405_v54 = vmul.f32 1.442695, %v403_v49 }
 0x27b   :  { %v204_v44 = vpop.xlane.xlu0 %203 }
 0x27c   :  { %632 = vpow2.f32 %v207_v43  ;;  %v206_v35 = vsub.f32 %v197_v7, %v204_v44 }
 0x27e   :  { %v209_v45 = vmul.f32 1.442695, %v206_v35 }
 0x27f   :  { %v299_v47 = vpop.xlane.xlu0 %298 }
 0x280   :  { %634 = vpow2.f32 %v209_v45  ;;  %v303_v48 = vsub.f32 %v295_v13, %v299_v47 }
 0x282   :  { %v305_v50 = vmul.f32 1.442695, %v303_v48 }
 0x283   :  { %v302_v51 = vpop.xlane.xlu0 %301 }
 0x284   :  { %636 = vpow2.f32 %v305_v50  ;;  %v304_v52 = vsub.f32 %v296_v19, %v302_v51 }
 0x286   :  { %v633_v53 = vpop.eup %632  ;;  %v307_v55 = vmul.f32 1.442695, %v304_v52 }
 0x287   :  { %v402_v56 = vpop.xlane.xlu0 %401  ;;  %v211_v57 = vsel %vm198_vm1, %v633_v53, 0.0 }
 0x288   :  { %638 = vpow2.f32 %v307_v55  ;;  %v404_v58 = vsub.f32 %v396_v25, %v402_v56  ;;  %212 = vadd.xlane.f32.xlu0 %v211_v57 }
 0x289   :  { %640 = vpow2.f32 %v405_v54 }
 0x28a   :  { %v635_v59 = vpop.eup %634  ;;  %v407_v60 = vmul.f32 1.442695, %v404_v58 }
 0x28b   :  { %v499_v61 = vpop.xlane.xlu0 %498  ;;  %v214_v62 = vsel %vm198_vm1, %v635_v59, 0.0 }
 0x28c   :  { %v503_v63 = vsub.f32 %v495_v29, %v499_v61  ;;  %215 = vadd.xlane.f32.xlu0 %v214_v62  ;;  %642 = vpow2.f32 %v407_v60  ;;  %v328_v61 = vrot.slane %v793_v42, %v768_v40 }
 0x28e   :  { %v797_v0 = vpop.eup %636  ;;  %v505_v1 = vmul.f32 1.442695, %v503_v63 }
 0x28f   :  { %v502_v2 = vpop.xlane.xlu0 %501  ;;  %v309_v5 = vsel %vm198_vm1, %v797_v0, 0.0 }
 0x290   :  { %v504_v6 = vsub.f32 %v496_v32, %v502_v2  ;;  %310 = vadd.xlane.f32.xlu0 %v309_v5  ;;  %644 = vpow2.f32 %v505_v1  ;;  %v230_v32 = vrot.slane %v793_v42, %v764_v38  ;;  %v348_v2 = vrot.slane %v793_v42, %v770_v41 }
 0x292   :  { %v801_v7 = vpop.eup %638  ;;  %v507_v8 = vmul.f32 1.442695, %v504_v6 }
 0x293   :  { %v312_v9 = vsel %vm198_vm1, %v801_v7, 0.0  ;;  %v805_v10 = vpop.eup %640 }
 0x294   :  { %646 = vpow2.f32 %v507_v8  ;;  %313 = vadd.xlane.f32.xlu0 %v312_v9  ;;  %v409_v11 = vsel %vm198_vm1, %v805_v10, 0.0 }
 0x296   :  { %v809_v12 = vpop.eup %642 }
 0x297   :  { %v412_v13 = vsel %vm198_vm1, %v809_v12, 0.0 }
 0x298   :  { %410 = vadd.xlane.f32.xlu0 %v409_v11 }
 0x29a   :  { %v813_v14 = vpop.eup %644 }
 0x29b   :  { %v509_v17 = vsel %vm198_vm1, %v813_v14, 0.0 }
 0x29c   :  { %413 = vadd.xlane.f32.xlu0 %v412_v13 }
 0x29e   :  { %v815_v15 = vpop.eup %646 }
 0x29f   :  { %v512_v16 = vsel %vm198_vm1, %v815_v15, 0.0 }
 0x2a0   :  { %513 = vadd.xlane.f32.xlu1 %v512_v16  ;;  %510 = vadd.xlane.f32.xlu0 %v509_v17 }
 0x315   :  { %v213_v18 = vpop.xlane.xlu0 %212 }
 0x316   :  { %648 = vrcp.f32 %v213_v18 }
 0x319   :  { %v216_v19 = vpop.xlane.xlu0 %215 }
 0x31a   :  { %650 = vrcp.f32 %v216_v19 }
 0x31d   :  { %v311_v20 = vpop.xlane.xlu0 %310 }
 0x31e   :  { %652 = vrcp.f32 %v311_v20 }
 0x320   :  { %v649_v21 = vpop.eup %648 }
 0x321   :  { %v219_v22 = vmul.f32 %v649_v21, %v213_v18  ;;  %v314_v23 = vpop.xlane.xlu0 %313  ;;  %v428_v18 = vrot.slane %v793_v42, %v760_v36 }
 0x322   :  { %654 = vrcp.f32 %v314_v23 }
 0x323   :  { %v221_v25 = vsub.f32 2.0, %v219_v22 }
 0x324   :  { %v651_v26 = vpop.eup %650 }
 0x325   :  { %v223_v27 = vmul.f32 %v649_v21, %v221_v25  ;;  %v220_v28 = vmul.f32 %v651_v26, %v216_v19  ;;  %v411_v29 = vpop.xlane.xlu0 %410 }
 0x326   :  { %656 = vrcp.f32 %v411_v29 }
 0x327   :  { %v222_v30 = vsub.f32 2.0, %v220_v28  ;;  %v225_v31 = vmul.f32 %v633_v53, %v223_v27 }
 0x328   :  { %v653_v33 = vpop.eup %652 }
 0x329   :  { %v224_v24 = vmul.f32 %v651_v26, %v222_v30  ;;  %v317_v43 = vmul.f32 %v653_v33, %v311_v20  ;;  %v414_v44 = vpop.xlane.xlu0 %413  ;;  %v231_v35 = vmul.f32 %v230_v32, %v225_v31  ;;  %v249_v45 = vmul.f32 %v248_v34, %v225_v31 }
 0x32a   :  { %658 = vrcp.f32 %v414_v44  ;;  %v448_v30 = vrot.slane %v793_v42, %v762_v37 }
 0x32b   :  { %v319_v46 = vsub.f32 2.0, %v317_v43  ;;  %v233_v47 = vsel %vm198_vm1, %v231_v35, 0.0  ;;  %v226_v48 = vmul.f32 %v635_v59, %v224_v24  ;;  %v251_v55 = vsel %vm198_vm1, %v249_v45, 0.0 }
 0x32c   :  { %v655_v49 = vpop.eup %654  ;;  %234 = vadd.xlane.f32.xlu0 %v233_v47 }
 0x32d   :  { %v321_v50 = vmul.f32 %v653_v33, %v319_v46  ;;  %v318_v51 = vmul.f32 %v655_v49, %v314_v23  ;;  %v511_v52 = vpop.xlane.xlu0 %510  ;;  %v514_v53 = vpop.xlane.xlu1 %513  ;;  %v232_v54 = vmul.f32 %v230_v32, %v226_v48  ;;  %v250_v58 = vmul.f32 %v248_v34, %v226_v48 }
 0x32e   :  { %660 = vrcp.f32 %v511_v52  ;;  %v528_v48 = vrot.slane %v793_v42, %v778_v3 }
 0x32f   :  { %v320_v56 = vsub.f32 2.0, %v318_v51  ;;  %662 = vrcp.f32 %v514_v53  ;;  %v236_v57 = vsel %vm198_vm1, %v232_v54, 0.0  ;;  %v323_v59 = vmul.f32 %v797_v0, %v321_v50 }
 0x330   :  { %v657_v60 = vpop.eup %656  ;;  %237 = vadd.xlane.f32.xlu1 %v236_v57  ;;  %252 = vadd.xlane.f32.xlu0 %v251_v55  ;;  %v254_v6 = vsel %vm198_vm1, %v250_v58, 0.0  ;;  %v548_v51 = vrot.slane %v793_v42, %v780_v4 }
 0x331   :  { %v322_v62 = vmul.f32 %v655_v49, %v320_v56  ;;  %v417_v63 = vmul.f32 %v657_v60, %v411_v29  ;;  %v329_v1 = vmul.f32 %v328_v61, %v323_v59  ;;  %v349_v13 = vmul.f32 %v348_v2, %v323_v59 }
 0x333   :  { %v419_v5 = vsub.f32 2.0, %v417_v63  ;;  %v324_v8 = vmul.f32 %v801_v7, %v322_v62  ;;  %v331_v11 = vsel %vm198_vm1, %v329_v1, 0.0  ;;  %v351_v7 = vsel %vm198_vm1, %v349_v13, 0.0  ;;  %v27_v62 = vld [vmem:[#allocation2 + $0x8] sm:$0xff] }
 0x334   :  { %v659_v9 = vpop.eup %658  ;;  %255 = vadd.xlane.f32.xlu1 %v254_v6  ;;  %332 = vadd.xlane.f32.xlu0 %v331_v11  ;;  %v260_v1 = vrot.slane %v27_v62, %v766_v39  ;;  %v340_v6 = vrot.slane %v27_v62, %v768_v40  ;;  %v360_v11 = vrot.slane %v27_v62, %v770_v41 }
 0x335   :  { %v421_v0 = vmul.f32 %v657_v60, %v419_v5  ;;  %v418_v16 = vmul.f32 %v659_v9, %v414_v44  ;;  %v330_v17 = vmul.f32 %v328_v61, %v324_v8  ;;  %v350_v21 = vmul.f32 %v348_v2, %v324_v8 }
 0x336   :  { %v242_v5 = vrot.slane %v27_v62, %v764_v38  ;;  %v540_v40 = vrot.slane %v27_v62, %v778_v3 }
 0x337   :  { %v420_v19 = vsub.f32 2.0, %v418_v16  ;;  %v334_v20 = vsel %vm198_vm1, %v330_v17, 0.0  ;;  %v423_v22 = vmul.f32 %v805_v10, %v421_v0  ;;  %v354_v32 = vsel %vm198_vm1, %v350_v21, 0.0 }
 0x338   :  { %v661_v23 = vpop.eup %660  ;;  %335 = vadd.xlane.f32.xlu1 %v334_v20  ;;  %352 = vadd.xlane.f32.xlu0 %v351_v7 }
 0x339   :  { %v663_v25 = vpop.eup %662  ;;  %v422_v26 = vmul.f32 %v659_v9, %v420_v19  ;;  %v517_v27 = vmul.f32 %v661_v23, %v511_v52  ;;  %v429_v28 = vmul.f32 %v428_v18, %v423_v22  ;;  %v449_v24 = vmul.f32 %v448_v30, %v423_v22 }
 0x33a   :  { %v518_v29 = vmul.f32 %v663_v25, %v514_v53  ;;  %v460_v19 = vrot.slane %v27_v62, %v762_v37  ;;  %v560_v37 = vrot.slane %v27_v62, %v780_v4 }
 0x33b   :  { %v519_v31 = vsub.f32 2.0, %v517_v27  ;;  %v431_v33 = vsel %vm198_vm1, %v429_v28, 0.0  ;;  %v424_v10 = vmul.f32 %v809_v12, %v422_v26  ;;  %v451_v49 = vsel %vm198_vm1, %v449_v24, 0.0 }
 0x33c   :  { %v520_v34 = vsub.f32 2.0, %v518_v29  ;;  %355 = vadd.xlane.f32.xlu1 %v354_v32  ;;  %432 = vadd.xlane.f32.xlu0 %v431_v33 }
 0x33d   :  { %v521_v43 = vmul.f32 %v661_v23, %v519_v31  ;;  %v430_v44 = vmul.f32 %v428_v18, %v424_v10  ;;  %v450_v46 = vmul.f32 %v448_v30, %v424_v10  ;;  %v440_v18 = vrot.slane %v27_v62, %v760_v36 }
 0x33e   :  { %v522_v35 = vmul.f32 %v663_v25, %v520_v34 }
 0x33f   :  { %v434_v45 = vsel %vm198_vm1, %v430_v44, 0.0  ;;  %v523_v47 = vmul.f32 %v813_v14, %v521_v43  ;;  %v454_v52 = vsel %vm198_vm1, %v450_v46, 0.0 }
 0x340   :  { %435 = vadd.xlane.f32.xlu1 %v434_v45  ;;  %v524_v12 = vmul.f32 %v815_v15, %v522_v35  ;;  %452 = vadd.xlane.f32.xlu0 %v451_v49 }
 0x341   :  { %v529_v50 = vmul.f32 %v528_v48, %v523_v47  ;;  %v549_v14 = vmul.f32 %v548_v51, %v523_v47 }
 0x342   :  { %v530_v54 = vmul.f32 %v528_v48, %v524_v12  ;;  %v550_v56 = vmul.f32 %v548_v51, %v524_v12  ;;  %v28_v51 = vld [vmem:[#allocation2 + $0x10] sm:$0xff] }
 0x343   :  { %v531_v53 = vsel %vm198_vm1, %v529_v50, 0.0  ;;  %v551_v57 = vsel %vm198_vm1, %v549_v14, 0.0 }
 0x344   :  { %455 = vadd.xlane.f32.xlu1 %v454_v52  ;;  %532 = vadd.xlane.f32.xlu0 %v531_v53  ;;  %v534_v55 = vsel %vm198_vm1, %v530_v54, 0.0  ;;  %v554_v15 = vsel %vm198_vm1, %v550_v56, 0.0  ;;  %v29_v52 = vld [vmem:[#allocation2 + $0x18] sm:$0xff] }
 0x348   :  { %535 = vadd.xlane.f32.xlu1 %v534_v55  ;;  %552 = vadd.xlane.f32.xlu0 %v551_v57 }
 0x34c   :  { %555 = vadd.xlane.f32.xlu1 %v554_v15 }
 0x3b9   :  { %v235_v58 = vpop.xlane.xlu0 %234 }
 0x3ba   :  { %v243_v0 = vmul.f32 %v242_v5, %v235_v58 }
 0x3bd   :  { %v253_v42 = vpop.xlane.xlu0 %252  ;;  %v238_v60 = vpop.xlane.xlu1 %237 }
 0x3be   :  { %v261_v9 = vmul.f32 %v260_v1, %v253_v42  ;;  %v244_v39 = vmul.f32 %v242_v5, %v238_v60  ;;  %v33_v42 = vld [vmem:[#allocation2 + $0x31] sm:$0x1] }
 0x3c0   :  { %v263_v21 = vadd.f32 %v261_v9, %v243_v0 }
 0x3c1   :  { %v256_v59 = vpop.xlane.xlu1 %255  ;;  %v333_v61 = vpop.xlane.xlu0 %332 }
 0x3c2   :  { %v341_v16 = vmul.f32 %v340_v6, %v333_v61  ;;  %v262_v17 = vmul.f32 %v260_v1, %v256_v59 }
 0x3c4   :  { %v343_v7 = vadd.f32 %v341_v16, %v263_v21  ;;  %v264_v25 = vadd.f32 %v262_v17, %v244_v39 }
 0x3c5   :  { %v336_v63 = vpop.xlane.xlu1 %335  ;;  %v353_v2 = vpop.xlane.xlu0 %352 }
 0x3c6   :  { %v361_v22 = vmul.f32 %v360_v11, %v353_v2  ;;  %v342_v23 = vmul.f32 %v340_v6, %v336_v63 }
 0x3c8   :  { %v363_v28 = vadd.f32 %v361_v22, %v343_v7  ;;  %v344_v29 = vadd.f32 %v342_v23, %v264_v25 }
 0x3c9   :  { %v356_v8 = vpop.xlane.xlu1 %355  ;;  %v433_v13 = vpop.xlane.xlu0 %432 }
 0x3ca   :  { %v441_v26 = vmul.f32 %v440_v18, %v433_v13  ;;  %v362_v41 = vmul.f32 %v360_v11, %v356_v8 }
 0x3cc   :  { %v443_v32 = vadd.f32 %v441_v26, %v363_v28  ;;  %v364_v33 = vadd.f32 %v362_v41, %v344_v29 }
 0x3cd   :  { %v436_v20 = vpop.xlane.xlu1 %435  ;;  %v453_v38 = vpop.xlane.xlu0 %452 }
 0x3ce   :  { %v461_v30 = vmul.f32 %v460_v19, %v453_v38  ;;  %v442_v31 = vmul.f32 %v440_v18, %v436_v20 }
 0x3d0   :  { %v463_v43 = vadd.f32 %v461_v30, %v443_v32  ;;  %v444_v44 = vadd.f32 %v442_v31, %v364_v33 }
 0x3d1   :  { %v456_v27 = vpop.xlane.xlu1 %455  ;;  %v533_v36 = vpop.xlane.xlu0 %532 }
 0x3d2   :  { %v541_v10 = vmul.f32 %v540_v40, %v533_v36  ;;  %v462_v34 = vmul.f32 %v460_v19, %v456_v27 }
 0x3d4   :  { %v543_v46 = vadd.f32 %v541_v10, %v463_v43  ;;  %v464_v47 = vadd.f32 %v462_v34, %v444_v44 }
 0x3d5   :  { %v536_v24 = vpop.xlane.xlu1 %535  ;;  %v553_v3 = vpop.xlane.xlu0 %552 }
 0x3d6   :  { %v542_v35 = vmul.f32 %v540_v40, %v536_v24  ;;  %v561_v45 = vmul.f32 %v560_v37, %v553_v3 }
 0x3d8   :  { %v563_v49 = vadd.f32 %v561_v45, %v543_v46  ;;  %v544_v12 = vadd.f32 %v542_v35, %v464_v47 }
 0x3d9   :  { %v556_v48 = vpop.xlane.xlu1 %555 }
 0x3da   :  { %v562_v50 = vmul.f32 %v560_v37, %v556_v48  ;;  %v565_v4 = vmul.f32 %v563_v49, %v28_v51 }
 0x3dc   :  { %v564_v53 = vadd.f32 %v562_v50, %v544_v12 }
 0x3de   :  { %v566_v54 = vmul.f32 %v564_v53, %v29_v52 }
 0x3e0   :  { %v567_v14 = vadd.f32 %v566_v54, %v565_v4 }
 0x3e2   :  { %v568_v55 = vrot.slane %v567_v14, 4 }
 0x3e4   :  { %v569_v56 = vadd.f32 %v568_v55, %v567_v14 }
 0x3e6   :  { %v570_v57 = vrot.slane %v569_v56, 2 }
 0x3e8   :  { %v571_v15 = vadd.f32 %v570_v57, %v569_v56 }
 0x3ea   :  { %v572_v58 = vrot.slane %v571_v15, 1 }
 0x3ec   :  { %v573_v60 = vadd.f32 %v572_v58, %v571_v15 }
 0x3ee   :  { %v574_v59 = vadd.f32 %v573_v60, %v33_v42 }
 0x3f0   :  { %575 = vst [vmem:[#allocation5] sm:$0x1] %v574_v59 }
 0x3f1   :  { %697 = shalt.err (!%p694_p12)
}
 0x3f2   :  { %s698_s4 = scalar_lea.hbm %s881_s2, 16 }
 0x3f3   :  { %p699_p13 = scmp.ne.s32.totalorder %s881_s2, %s698_s4  ;;  %p702_p0 = scmp.lt.u32.totalorder %s698_s4, %s881_s2 }
 0x3f5   :  { %p704_p1 = pnand %p702_p0, %p699_p13 }
 0x3f7   :  { %707 = shalt.err (!%p704_p1)
}
 0x3f8   :  { %585 = dma.vmem_to_hbm [thread:$0]  %s583_s27, 16, %s881_s2, [#allocation4]  }
 0x3f9   :  { %710 = dma.done.wait [#allocation4], 16  }
 0x3fa   :  { %711 = vsyncadd [#allocation4], 4294967280 }
 0x3fb   :  { %589 = vsyncpa [#allocation3], 1 }
 0x3fc   :  { %590 = vsyncpa [#allocation4], 1 }

</bundles_post_ra>
